<compile_context>
chip_gen: v5e
topology: v5e:2x2
jax: 0.10.0
libtpu: 0.0.40
codegen_flags: <defaults>
</compile_context>

<pallas_src>
import functools

import jax
import jax.numpy as jnp
from jax.experimental import pallas as pl
from jax.experimental.pallas import tpu as pltpu


def _round_up(n: int, m: int) -> int:
    return ((n + m - 1) // m) * m


def _rule_encoder_kernel(x_ref, w1_ref, b1_ref, w2_ref, b2_ref, o_ref):
    # Two MXU matmuls + VPU ReLU on one batch tile, all resident in VMEM.
    x = x_ref[...]
    h = jnp.dot(x, w1_ref[...], preferred_element_type=jnp.float32) + b1_ref[...]
    h = jnp.maximum(h, 0.0)  # ReLU (padded hidden lanes stay exactly 0)
    y = jnp.dot(h.astype(w2_ref.dtype), w2_ref[...],
                preferred_element_type=jnp.float32) + b2_ref[...]
    o_ref[...] = y.astype(o_ref.dtype)


@functools.partial(jax.jit, static_argnames=("block_batch",))
def rule_encoder_forward(x, w1, b1, w2, b2, *, block_batch: int = 512):
    """Forward pass of RuleEncoder as a Pallas kernel.

    x  : (B, input_dim)
    w1 : (input_dim, hidden_dim)   b1 : (1, hidden_dim)
    w2 : (hidden_dim, output_dim)  b2 : (1, output_dim)
    returns (B, output_dim)
    """
    B, input_dim = x.shape
    hidden_dim = w1.shape[1]
    output_dim = w2.shape[1]

    # ---- Lane-dense padding (multiples of 128) for hidden/output dims. ----
    hid_p = _round_up(max(hidden_dim, 1), 128)
    out_p = _round_up(max(output_dim, 1), 128)

    w1_p = jnp.pad(w1, ((0, 0), (0, hid_p - hidden_dim)))
    b1_p = jnp.pad(b1, ((0, 0), (0, hid_p - hidden_dim)))
    w2_p = jnp.pad(w2, ((0, hid_p - hidden_dim), (0, out_p - output_dim)))
    b2_p = jnp.pad(b2, ((0, 0), (0, out_p - output_dim)))

    # ---- Batch tile: at most `block_batch` rows, multiple of 8 sublanes. ----
    # VMEM budget (double-buffered x + out tiles + resident weights) stays far
    # below v7x's 64 MiB for block_batch=512 at these feature sizes.
    tb = min(block_batch, _round_up(B, 8))
    B_p = _round_up(B, tb)
    x_p = jnp.pad(x, ((0, B_p - B), (0, 0)))

    grid = (B_p // tb,)

    out_padded = pl.pallas_call(
        _rule_encoder_kernel,
        out_shape=jax.ShapeDtypeStruct((B_p, out_p), x.dtype),
        grid=grid,
        in_specs=[
            pl.BlockSpec((tb, input_dim), lambda i: (i, 0)),   # x tile
            pl.BlockSpec((input_dim, hid_p), lambda i: (0, 0)),  # w1 (resident)
            pl.BlockSpec((1, hid_p), lambda i: (0, 0)),          # b1 (resident)
            pl.BlockSpec((hid_p, out_p), lambda i: (0, 0)),      # w2 (resident)
            pl.BlockSpec((1, out_p), lambda i: (0, 0)),          # b2 (resident)
        ],
        out_specs=pl.BlockSpec((tb, out_p), lambda i: (i, 0)),
        compiler_params=pltpu.CompilerParams(
            # Batch tiles are independent -> shard across TCs on v7x.
            dimension_semantics=("parallel",),
        ),
    )(x_p, w1_p, b1_p, w2_p, b2_p)

    # Strip batch / output padding.
    return out_padded[:B, :output_dim]


def init_rule_encoder_params(key, input_dim, output_dim, hidden_dim=4,
                             dtype=jnp.float32):
    """Deterministic init mirroring nn.Linear default (U[-1/sqrt(fan_in), +])."""
    k1, k2, k3, k4 = jax.random.split(key, 4)
    bound1 = 1.0 / jnp.sqrt(jnp.asarray(input_dim, dtype))
    bound2 = 1.0 / jnp.sqrt(jnp.asarray(hidden_dim, dtype))
    # Stored as (in, out) so the kernel does x @ W (PyTorch stores (out, in)).
    w1 = jax.random.uniform(k1, (input_dim, hidden_dim), dtype,
                            minval=-bound1, maxval=bound1)
    b1 = jax.random.uniform(k2, (1, hidden_dim), dtype,
                            minval=-bound1, maxval=bound1)
    w2 = jax.random.uniform(k3, (hidden_dim, output_dim), dtype,
                            minval=-bound2, maxval=bound2)
    b2 = jax.random.uniform(k4, (1, output_dim), dtype,
                            minval=-bound2, maxval=bound2)
    return w1, b1, w2, b2


if __name__ == "__main__":
    key = jax.random.PRNGKey(0)
    kx, kp = jax.random.split(key)

    batch = 8
    input_dim = 16
    hidden_dim = 4
    output_dim = 16

    x = jax.random.normal(kx, (batch, input_dim), jnp.float32)
    w1, b1, w2, b2 = init_rule_encoder_params(kp, input_dim, output_dim,
                                              hidden_dim)

    out = rule_encoder_forward(x, w1, b1, w2, b2)
    out = jax.block_until_ready(out)

    # Pure-JAX reference check of the same math.
    ref = jnp.maximum(x @ w1 + b1, 0.0) @ w2 + b2
    assert out.shape == (batch, output_dim)
    assert jnp.allclose(out, ref, atol=1e-5, rtol=1e-5), (
        float(jnp.max(jnp.abs(out - ref))))

    print("KERNEL_OK")
</pallas_src>

<mosaic_0001>
module attributes {stable_mosaic.version = 11 : i64} {
  func.func @_rule_encoder_kernel(%arg0: i32, %arg1: memref<8x16xf32, #tpu.memory_space<vmem>>, %arg2: memref<16x128xf32, #tpu.memory_space<vmem>>, %arg3: memref<1x128xf32, #tpu.memory_space<vmem>>, %arg4: memref<128x128xf32, #tpu.memory_space<vmem>>, %arg5: memref<1x128xf32, #tpu.memory_space<vmem>>, %arg6: memref<8x128xf32, #tpu.memory_space<vmem>>) attributes {dimension_semantics = [#tpu.dimension_semantics<parallel>], iteration_bounds = array<i64: 1>, scalar_prefetch = 0 : i64, scratch_operands = 0 : i64, tpu.core_type = #tpu.core_type<tc>, window_params = [{transform_indices = @transform_0, window_bounds = array<i64: 8, 16>}, {pipeline_mode = #tpu.pipeline_mode<synchronous>, transform_indices = @transform_1, window_bounds = array<i64: 16, 128>}, {pipeline_mode = #tpu.pipeline_mode<synchronous>, transform_indices = @transform_2, window_bounds = array<i64: 1, 128>}, {pipeline_mode = #tpu.pipeline_mode<synchronous>, transform_indices = @transform_3, window_bounds = array<i64: 128, 128>}, {pipeline_mode = #tpu.pipeline_mode<synchronous>, transform_indices = @transform_4, window_bounds = array<i64: 1, 128>}, {transform_indices = @transform_5, window_bounds = array<i64: 8, 128>}]} {
    %c0 = arith.constant 0 : index
    %c0_0 = arith.constant 0 : index
    %0 = vector.load %arg1[%c0, %c0_0] : memref<8x16xf32, #tpu.memory_space<vmem>>, vector<8x16xf32>
    %c0_1 = arith.constant 0 : index
    %c0_2 = arith.constant 0 : index
    %1 = vector.load %arg2[%c0_1, %c0_2] : memref<16x128xf32, #tpu.memory_space<vmem>>, vector<16x128xf32>
    %cst = arith.constant dense<0.000000e+00> : vector<8x128xf32>
    %2 = tpu.matmul %0, %1, %cst {dimension_numbers = #tpu.dot_dimension_numbers<[1], [0], [0], [1], [0, 0, 1, 1], [], []>} : vector<8x16xf32>, vector<16x128xf32>, vector<8x128xf32> -> vector<8x128xf32>
    %c0_3 = arith.constant 0 : index
    %c0_4 = arith.constant 0 : index
    %3 = vector.load %arg3[%c0_3, %c0_4] : memref<1x128xf32, #tpu.memory_space<vmem>>, vector<1x128xf32>
    %4 = vector.broadcast %3 : vector<1x128xf32> to vector<8x128xf32>
    %5 = arith.addf %2, %4 : vector<8x128xf32>
    %cst_5 = arith.constant 0.000000e+00 : f32
    %6 = vector.broadcast %cst_5 : f32 to vector<8x128xf32>
    %7 = arith.maximumf %5, %6 : vector<8x128xf32>
    %c0_6 = arith.constant 0 : index
    %c0_7 = arith.constant 0 : index
    %8 = vector.load %arg4[%c0_6, %c0_7] : memref<128x128xf32, #tpu.memory_space<vmem>>, vector<128x128xf32>
    %cst_8 = arith.constant dense<0.000000e+00> : vector<8x128xf32>
    %9 = tpu.matmul %7, %8, %cst_8 {dimension_numbers = #tpu.dot_dimension_numbers<[1], [0], [0], [1], [0, 0, 1, 1], [], []>} : vector<8x128xf32>, vector<128x128xf32>, vector<8x128xf32> -> vector<8x128xf32>
    %c0_9 = arith.constant 0 : index
    %c0_10 = arith.constant 0 : index
    %10 = vector.load %arg5[%c0_9, %c0_10] : memref<1x128xf32, #tpu.memory_space<vmem>>, vector<1x128xf32>
    %11 = vector.broadcast %10 : vector<1x128xf32> to vector<8x128xf32>
    %12 = arith.addf %9, %11 : vector<8x128xf32>
    %c0_11 = arith.constant 0 : index
    %c0_12 = arith.constant 0 : index
    %13 = vector.load %arg6[%c0_11, %c0_12] : memref<8x128xf32, #tpu.memory_space<vmem>>, vector<8x128xf32>
    tpu.vector_store %arg6[%c0_11, %c0_12], %12 {strides = array<i32>} : memref<8x128xf32, #tpu.memory_space<vmem>>, vector<8x128xf32>,
    return
  }
  func.func @transform_0(%arg0: i32) -> (i32, i32) {
    %c0_i32 = arith.constant 0 : i32
    %c0_i32_0 = arith.constant 0 : i32
    return %arg0, %c0_i32 : i32, i32
  }
  func.func @transform_1(%arg0: i32) -> (i32, i32) {
    %c0_i32 = arith.constant 0 : i32
    %c0_i32_0 = arith.constant 0 : i32
    %c0_i32_1 = arith.constant 0 : i32
    return %c0_i32, %c0_i32_0 : i32, i32
  }
  func.func @transform_2(%arg0: i32) -> (i32, i32) {
    %c0_i32 = arith.constant 0 : i32
    %c0_i32_0 = arith.constant 0 : i32
    %c0_i32_1 = arith.constant 0 : i32
    return %c0_i32, %c0_i32_0 : i32, i32
  }
  func.func @transform_3(%arg0: i32) -> (i32, i32) {
    %c0_i32 = arith.constant 0 : i32
    %c0_i32_0 = arith.constant 0 : i32
    %c0_i32_1 = arith.constant 0 : i32
    return %c0_i32, %c0_i32_0 : i32, i32
  }
  func.func @transform_4(%arg0: i32) -> (i32, i32) {
    %c0_i32 = arith.constant 0 : i32
    %c0_i32_0 = arith.constant 0 : i32
    %c0_i32_1 = arith.constant 0 : i32
    return %c0_i32, %c0_i32_0 : i32, i32
  }
  func.func @transform_5(%arg0: i32) -> (i32, i32) {
    %c0_i32 = arith.constant 0 : i32
    %c0_i32_0 = arith.constant 0 : i32
    return %arg0, %c0_i32 : i32, i32
  }
}

</mosaic_0001>

<bundles_post_ra>
// kernel: rule_encoder_forward.1
= control target key start
LH: loop header
LB: loop body
LE: loop exit
PB: predicated region body
PF: predicated region fallthrough
CT: control target
= control target key end

     0   :  { %vm28_vm0 = vcmask 130048   ;;  %s237_s0 = inlined_call_operand.vmem [shape: f32[8,16], index: 0, kind: input, shape index: {}]   ;;  %s238_s1 = inlined_call_operand.vmem [shape: f32[16,128], index: 1, kind: input, shape index: {}]   ;;  %s239_s2 = inlined_call_operand.vmem [shape: f32[1,128], index: 2, kind: input, shape index: {}]   ;;  %s240_s3 = inlined_call_operand.vmem [shape: f32[128,128], index: 3, kind: input, shape index: {}]   ;;  %s241_s4 = inlined_call_operand.vmem [shape: f32[1,128], index: 4, kind: input, shape index: {}]   ;;  %s242_s5 = inlined_call_operand.hbm [shape: f32[8,128], index: 5, kind: output, shape index: {}]  }
   0x1   :  { %v23_v0 = vld [vmem:[%s238_s1 + $0x8] sm:$0xff]  ;;  %v22_v1 = vld [vmem:[%s238_s1] sm:$0xff]  ;;  %v68_v3 = vld [vmem:[%s240_s3 + $0x78] sm:$0xff] }
   0x2   :  { %46 = vmatpush.msra.mxu0 %v23_v0  ;;  %v21_v2 = vld [vmem:[%s237_s0] sm:$0xff]  ;;  %v67_v4 = vld [vmem:[%s240_s3 + $0x70] sm:$0xff]  ;;  %73 = vmatpush.msra.mxu1 %v68_v3  ;;  %v66_v5 = vld [vmem:[%s240_s3 + $0x68] sm:$0xff] }
   0x3   :  { %v65_v6 = vld [vmem:[%s240_s3 + $0x60] sm:$0xff] }
   0x4   :  { %47 = vmatpush.msra.mxu0 %v22_v1  ;;  %74 = vmatpush.msra.mxu1 %v67_v4 }
   0x5   :  { %110 = vmatmul.msk.f32.vlgmr.msra.gmra.mxu0 %vm28_vm0, %v21_v2 }
   0x6   :  { %75 = vmatpush.msra.mxu1 %v66_v5 }
   0x7   :  { %10 = vsyncpa [#allocation3], 0  ;;  %v64_v7 = vld [vmem:[%s240_s3 + $0x58] sm:$0xff]  ;;  %v63_v8 = vld [vmem:[%s240_s3 + $0x50] sm:$0xff]  ;;  %s140_s6 = smov [#allocation2]   ;;  %s101_s10 = sshll.u32 %s242_s5, 4  ;;  %s102_s10 = int_to_ptr.hbm [resolvable:$true] %s101_s10 }
   0x8   :  { %76 = vmatpush.msra.mxu1 %v65_v6  ;;  %v62_v9 = vld [vmem:[%s240_s3 + $0x48] sm:$0xff]  ;;  %v61_v10 = vld [vmem:[%s240_s3 + $0x40] sm:$0xff]  ;;  %v60_v11 = vld [vmem:[%s240_s3 + $0x38] sm:$0xff]  ;;  %s99_s7 = sshll.u32 %s140_s6, 4  ;;  %s100_s7 = int_to_ptr.vmem [resolvable:$true] %s99_s7 }
   0x9   :  { %v59_v12 = vld [vmem:[%s240_s3 + $0x30] sm:$0xff]  ;;  %v58_v13 = vld [vmem:[%s240_s3 + $0x28] sm:$0xff]  ;;  %v57_v14 = vld [vmem:[%s240_s3 + $0x20] sm:$0xff] }
   0xa   :  { %77 = vmatpush.msra.mxu1 %v64_v7  ;;  %v56_v15 = vld [vmem:[%s240_s3 + $0x18] sm:$0xff]  ;;  %v55_v16 = vld [vmem:[%s240_s3 + $0x10] sm:$0xff]  ;;  %v54_v17 = vld [vmem:[%s240_s3 + $0x8] sm:$0xff] }
   0xb   :  { %v53_v18 = vld [vmem:[%s240_s3] sm:$0xff] }
   0xc   :  { %78 = vmatpush.msra.mxu1 %v63_v8  ;;  %v112_v19 = vld [vmem:[%s239_s2] ss:$0 sm:$0xff] }
   0xd   :  { %v113_v23 = vld [vmem:[%s241_s4] ss:$0 sm:$0xff] }
   0xe   :  { %79 = vmatpush.msra.mxu1 %v62_v9 }
  0x10   :  { %80 = vmatpush.msra.mxu1 %v61_v10 }
  0x12   :  { %81 = vmatpush.msra.mxu1 %v60_v11 }
  0x14   :  { %82 = vmatpush.msra.mxu1 %v59_v12 }
  0x16   :  { %83 = vmatpush.msra.mxu1 %v58_v13 }
  0x18   :  { %84 = vmatpush.msra.mxu1 %v57_v14 }
  0x1a   :  { %85 = vmatpush.msra.mxu1 %v56_v15 }
  0x1c   :  { %86 = vmatpush.msra.mxu1 %v55_v16 }
  0x1e   :  { %87 = vmatpush.msra.mxu1 %v54_v17 }
  0x20   :  { %88 = vmatpush.msra.mxu1 %v53_v18 }
  0x82   :  { %v49_v20 = vpop.f32.mrf.mxu0 }
  0x83   :  { %v50_v21 = vadd.f32 %v112_v19, %v49_v20 }
  0x85   :  { %v52_v22 = vmax.f32 %v50_v21, 0.0 }
  0x87   :  { %89 = vmatmul.f32.vlgmr.msra.gmra.mxu1 %v52_v22 }
 0x104   :  { %v90_v24 = vpop.f32.mrf.mxu1 }
 0x105   :  { %v91_v25 = vadd.f32 %v113_v23, %v90_v24 }
 0x107   :  { %93 = vst [vmem:[#allocation2] sm:$0xff] %v91_v25 }
 0x108   :  { %104 = dma.vmem_to_hbm [thread:$0]  %s100_s7, 128, %s102_s10, [#allocation3]  }
 0x109   :  { %138 = dma.done.wait [#allocation3], 128  }
 0x10a   :  { %139 = vsyncadd [#allocation3], 4294967168 }
 0x10b   :  { %109 = vsyncpa [#allocation3], 1 }

</bundles_post_ra>
